<compile_context>
chip_gen: v6e
topology: v6e:2x2x1
jax: 0.10.0
libtpu: 0.0.40
codegen_flags: <defaults>
</compile_context>

<pallas_src>
import functools

import numpy as np
import jax
import jax.numpy as jnp
from jax.experimental import pallas as pl
from jax.experimental.pallas import tpu as pltpu

_NEG_LARGE = -1e30  # pad value for iota on padded classes: exp(_NEG_LARGE) == 0 in f32


def _round_up(v, m):
    return ((v + m - 1) // m) * m


def _vs_loss_kernel(n_total, x_ref, tgt_ref, invd_ref, iota_ref, out_ref, acc_ref):
    """One row tile: accumulate the sum of per-sample NLL into acc_ref.

    x_ref:   (TILE_N, C_pad)  input logits (any float dtype, upcast to f32)
    tgt_ref: (TILE_N, 1)      int32 class ids (padded rows hold 0, masked)
    invd_ref/iota_ref: (1, C_pad) f32 per-class constants (lane-dense)
    out_ref: (1, 1) f32 final mean loss (written on the last grid step)
    acc_ref: (1, 1) f32 VMEM scratch accumulator
    """
    pid = pl.program_id(0)

    @pl.when(pid == 0)
    def _init():
        acc_ref[...] = jnp.zeros_like(acc_ref)

    x = x_ref[...].astype(jnp.float32)
    logits = x * invd_ref[...] + iota_ref[...]            # x / Delta + iota

    # numerically stable log-sum-exp over classes (padded lanes ~ -inf -> 0)
    m = jnp.max(logits, axis=-1, keepdims=True)           # (TILE_N, 1)
    lse = jnp.log(jnp.sum(jnp.exp(logits - m), axis=-1, keepdims=True)) + m

    tn, cp = logits.shape
    col_ids = jax.lax.broadcasted_iota(jnp.int32, (tn, cp), 1)
    # predicated select instead of one-hot cast + multiply
    tgt_logit = jnp.sum(jnp.where(col_ids == tgt_ref[...], logits, 0.0),
                        axis=-1, keepdims=True)           # (TILE_N, 1)

    per_sample = lse - tgt_logit                          # -log_softmax[target]

    # mask out rows that only exist because N was padded to a tile multiple
    row_ids = pid * tn + jax.lax.broadcasted_iota(jnp.int32, (tn, 1), 0)
    per_sample = jnp.where(row_ids < n_total, per_sample, 0.0)

    acc_ref[...] += jnp.sum(per_sample, keepdims=True)    # (1, 1)

    @pl.when(pid == pl.num_programs(0) - 1)
    def _finalize():
        out_ref[...] = acc_ref[...] / float(n_total)      # mean over the TRUE N


def vs_loss_pallas(x, target, delta_list, iota_list, *, tile_n=None):
    """x: [N, C] float (f32 or bf16), target: [N] int, delta/iota: [C] -> scalar."""
    n, c = x.shape
    c_pad = _round_up(c, 128)                             # lane-dense class dim

    # Row tile sized so the double-buffered x blocks stay well under scoped
    # VMEM defaults on every generation (v5e 16 MiB scoped, v7x 64 MiB phys).
    bytes_per = jnp.dtype(x.dtype).itemsize
    if tile_n is None:
        budget = 8 * 1024 * 1024                          # for the x double-buffer
        tile_n = budget // (2 * c_pad * bytes_per)
        tile_n = max(8, min(1024, (tile_n // 8) * 8))
    tile_n = min(tile_n, _round_up(n, 8))                 # don't over-pad tiny N
    n_pad = _round_up(n, tile_n)
    grid_n = n_pad // tile_n

    # --- pad inputs (x / 1/Delta with 0, iota with a huge negative) ----------
    x_p = x
    if n_pad != n or c_pad != c:
        x_p = jnp.pad(x, ((0, n_pad - n), (0, c_pad - c)))

    tgt = target.astype(jnp.int32)
    if n_pad != n:
        tgt = jnp.pad(tgt, (0, n_pad - n))                # padded rows -> class 0 (masked)
    tgt2d = tgt.reshape(n_pad, 1)

    inv_delta = (1.0 / jnp.asarray(delta_list)).astype(jnp.float32).reshape(1, c)
    iota = jnp.asarray(iota_list).astype(jnp.float32).reshape(1, c)
    if c_pad != c:
        inv_delta = jnp.pad(inv_delta, ((0, 0), (0, c_pad - c)))
        iota = jnp.pad(iota, ((0, 0), (0, c_pad - c)), constant_values=_NEG_LARGE)

    kernel = functools.partial(_vs_loss_kernel, n)

    out = pl.pallas_call(
        kernel,
        out_shape=jax.ShapeDtypeStruct((1, 1), jnp.float32),
        grid_spec=pltpu.PrefetchScalarGridSpec(
            num_scalar_prefetch=0,
            grid=(grid_n,),
            in_specs=[
                pl.BlockSpec((tile_n, c_pad), lambda i: (i, 0)),   # x rows
                pl.BlockSpec((tile_n, 1), lambda i: (i, 0)),       # targets
                pl.BlockSpec((1, c_pad), lambda i: (0, 0)),        # 1/Delta (resident)
                pl.BlockSpec((1, c_pad), lambda i: (0, 0)),        # iota    (resident)
            ],
            out_specs=pl.BlockSpec((1, 1), lambda i: (0, 0)),      # scalar loss
            scratch_shapes=[pltpu.VMEM((1, 1), jnp.float32)],      # running sum
        ),
        compiler_params=pltpu.CompilerParams(
            dimension_semantics=("arbitrary",),                    # reduction axis
            vmem_limit_bytes=32 * 1024 * 1024,
        ),
    )(x_p, tgt2d, inv_delta, iota)
    return out[0, 0]


def vs_loss_reference(x, target, delta_list, iota_list):
    """Pure-JAX reference matching F.cross_entropy(x/Delta + iota, target)."""
    logits = x.astype(jnp.float32) / delta_list[None, :] + iota_list[None, :]
    logp = jax.nn.log_softmax(logits, axis=-1)
    nll = -jnp.take_along_axis(logp, target[:, None], axis=-1)[:, 0]
    return jnp.mean(nll)


if __name__ == "__main__":
    # ---- deterministic "parameters" (module __init__) -----------------------
    num_classes = 16
    batch = 8
    cls_num_list = [10 * (i + 1) for i in range(num_classes)]  # synthetic counts
    gamma, tau = 0.3, 1.0

    cls_probs = np.array([c / sum(cls_num_list) for c in cls_num_list],
                         dtype=np.float64)
    temp = (1.0 / np.array(cls_num_list, dtype=np.float64)) ** gamma
    temp = temp / np.min(temp)
    iota_np = tau * np.log(cls_probs)
    delta_np = temp

    delta_list = jnp.asarray(delta_np, dtype=jnp.float32)
    iota_list = jnp.asarray(iota_np, dtype=jnp.float32)

    # ---- deterministic inputs ------------------------------------------------
    key = jax.random.PRNGKey(0)
    kx, kt = jax.random.split(key)
    x = jax.random.normal(kx, (batch, num_classes), dtype=jnp.float32)
    target = jax.random.randint(kt, (batch,), 0, num_classes, dtype=jnp.int32)

    # ---- run -----------------------------------------------------------------
    loss = vs_loss_pallas(x, target, delta_list, iota_list)
    jax.block_until_ready(loss)

    ref = vs_loss_reference(x, target, delta_list, iota_list)
    assert np.allclose(np.asarray(loss), np.asarray(ref), rtol=1e-5, atol=1e-5), (
        f"mismatch: pallas={loss} ref={ref}")

    print("KERNEL_OK")
</pallas_src>

<mosaic_0001>
module attributes {stable_mosaic.version = 11 : i64} {
  func.func @_vs_loss_kernel(%arg0: i32, %arg1: memref<8x128xf32, #tpu.memory_space<vmem>>, %arg2: memref<8x1xi32, #tpu.memory_space<vmem>>, %arg3: memref<1x128xf32, #tpu.memory_space<vmem>>, %arg4: memref<1x128xf32, #tpu.memory_space<vmem>>, %arg5: memref<1x1xf32, #tpu.memory_space<vmem>>, %arg6: memref<1x1xf32, #tpu.memory_space<vmem>>) attributes {dimension_semantics = [#tpu.dimension_semantics<arbitrary>], iteration_bounds = array<i64: 1>, scalar_prefetch = 0 : i64, scratch_operands = 1 : i64, tpu.core_type = #tpu.core_type<tc>, window_params = [{transform_indices = @transform_0, window_bounds = array<i64: 8, 128>}, {transform_indices = @transform_1, window_bounds = array<i64: 8, 1>}, {pipeline_mode = #tpu.pipeline_mode<synchronous>, transform_indices = @transform_2, window_bounds = array<i64: 1, 128>}, {pipeline_mode = #tpu.pipeline_mode<synchronous>, transform_indices = @transform_3, window_bounds = array<i64: 1, 128>}, {pipeline_mode = #tpu.pipeline_mode<synchronous>, transform_indices = @transform_4, window_bounds = array<i64: 1, 1>}]} {
    %c0_i32 = arith.constant 0 : i32
    %0 = arith.cmpi eq, %arg0, %c0_i32 : i32
    %1 = arith.extui %0 : i1 to i32
    %c0_i32_0 = arith.constant 0 : i32
    %2 = arith.cmpi ne, %1, %c0_i32_0 : i32
    scf.if %2 {
      %cst_20 = arith.constant 0.000000e+00 : f32
      %47 = vector.broadcast %cst_20 : f32 to vector<1x1xf32>
      %c0_21 = arith.constant 0 : index
      %c0_22 = arith.constant 0 : index
      %48 = vector.load %arg6[%c0_21, %c0_22] : memref<1x1xf32, #tpu.memory_space<vmem>>, vector<1x1xf32>
      tpu.vector_store %arg6[%c0_21, %c0_22], %47 {strides = array<i32>} : memref<1x1xf32, #tpu.memory_space<vmem>>, vector<1x1xf32>,
    } else {
    }
    %c0 = arith.constant 0 : index
    %c0_1 = arith.constant 0 : index
    %3 = vector.load %arg1[%c0, %c0_1] : memref<8x128xf32, #tpu.memory_space<vmem>>, vector<8x128xf32>
    %c0_2 = arith.constant 0 : index
    %c0_3 = arith.constant 0 : index
    %4 = vector.load %arg3[%c0_2, %c0_3] : memref<1x128xf32, #tpu.memory_space<vmem>>, vector<1x128xf32>
    %5 = vector.broadcast %4 : vector<1x128xf32> to vector<8x128xf32>
    %6 = arith.mulf %3, %5 : vector<8x128xf32>
    %c0_4 = arith.constant 0 : index
    %c0_5 = arith.constant 0 : index
    %7 = vector.load %arg4[%c0_4, %c0_5] : memref<1x128xf32, #tpu.memory_space<vmem>>, vector<1x128xf32>
    %8 = vector.broadcast %7 : vector<1x128xf32> to vector<8x128xf32>
    %9 = arith.addf %6, %8 : vector<8x128xf32>
    %cst = arith.constant dense<0xFF800000> : vector<8xf32>
    %10 = vector.multi_reduction <maximumf>, %9, %cst [1] : vector<8x128xf32> to vector<8xf32>
    %11 = vector.shape_cast %10 : vector<8xf32> to vector<8x1xf32>
    %12 = vector.broadcast %11 : vector<8x1xf32> to vector<8x128xf32>
    %13 = arith.subf %9, %12 : vector<8x128xf32>
    %14 = math.exp %13 : vector<8x128xf32>
    %cst_6 = arith.constant dense<0.000000e+00> : vector<8xf32>
    %15 = vector.multi_reduction <add>, %14, %cst_6 [1] : vector<8x128xf32> to vector<8xf32>
    %16 = vector.shape_cast %15 : vector<8xf32> to vector<8x1xf32>
    %17 = math.log %16 : vector<8x1xf32>
    %18 = arith.addf %17, %11 : vector<8x1xf32>
    %19 = tpu.iota {dimensions = array<i32: 1>} : vector<8x128xi32>
    %c0_7 = arith.constant 0 : index
    %c0_8 = arith.constant 0 : index
    %20 = vector.load %arg2[%c0_7, %c0_8] : memref<8x1xi32, #tpu.memory_space<vmem>>, vector<8x1xi32>
    %21 = vector.broadcast %20 : vector<8x1xi32> to vector<8x128xi32>
    %22 = arith.cmpi eq, %19, %21 : vector<8x128xi32>
    %cst_9 = arith.constant 0.000000e+00 : f32
    %23 = vector.broadcast %cst_9 : f32 to vector<8x128xf32>
    %24 = arith.select %22, %9, %23 : vector<8x128xi1>, vector<8x128xf32>
    %cst_10 = arith.constant dense<0.000000e+00> : vector<8xf32>
    %25 = vector.multi_reduction <add>, %24, %cst_10 [1] : vector<8x128xf32> to vector<8xf32>
    %26 = vector.shape_cast %25 : vector<8xf32> to vector<8x1xf32>
    %27 = arith.subf %18, %26 : vector<8x1xf32>
    %c8_i32 = arith.constant 8 : i32
    %28 = arith.muli %arg0, %c8_i32 : i32
    %29 = tpu.iota {dimensions = array<i32: 0>} : vector<8x1xi32>
    %30 = vector.broadcast %28 : i32 to vector<8x1xi32>
    %31 = arith.addi %30, %29 : vector<8x1xi32>
    %c8_i32_11 = arith.constant 8 : i32
    %32 = vector.broadcast %c8_i32_11 : i32 to vector<8x1xi32>
    %33 = arith.cmpi slt, %31, %32 : vector<8x1xi32>
    %cst_12 = arith.constant 0.000000e+00 : f32
    %34 = vector.broadcast %cst_12 : f32 to vector<8x1xf32>
    %35 = arith.select %33, %27, %34 : vector<8x1xi1>, vector<8x1xf32>
    %c0_13 = arith.constant 0 : index
    %c0_14 = arith.constant 0 : index
    %36 = vector.load %arg6[%c0_13, %c0_14] : memref<1x1xf32, #tpu.memory_space<vmem>>, vector<1x1xf32>
    %37 = vector.shape_cast %35 : vector<8x1xf32> to vector<1x8x1xf32>
    %cst_15 = arith.constant dense<0.000000e+00> : vector<1xf32>
    %38 = vector.multi_reduction <add>, %37, %cst_15 [1, 2] : vector<1x8x1xf32> to vector<1xf32>
    %39 = vector.shape_cast %38 : vector<1xf32> to vector<1x1x1xf32>
    %40 = vector.extract %39[0, 0, 0] : f32 from vector<1x1x1xf32>
    %41 = vector.broadcast %40 : f32 to vector<1x1xf32>
    %42 = arith.addf %36, %41 : vector<1x1xf32>
    %c0_16 = arith.constant 0 : index
    %c0_17 = arith.constant 0 : index
    %43 = vector.load %arg6[%c0_16, %c0_17] : memref<1x1xf32, #tpu.memory_space<vmem>>, vector<1x1xf32>
    tpu.vector_store %arg6[%c0_16, %c0_17], %42 {strides = array<i32>} : memref<1x1xf32, #tpu.memory_space<vmem>>, vector<1x1xf32>,
    %c0_i32_18 = arith.constant 0 : i32
    %44 = arith.cmpi eq, %arg0, %c0_i32_18 : i32
    %45 = arith.extui %44 : i1 to i32
    %c0_i32_19 = arith.constant 0 : i32
    %46 = arith.cmpi ne, %45, %c0_i32_19 : i32
    scf.if %46 {
      %c0_20 = arith.constant 0 : index
      %c0_21 = arith.constant 0 : index
      %47 = vector.load %arg6[%c0_20, %c0_21] : memref<1x1xf32, #tpu.memory_space<vmem>>, vector<1x1xf32>
      %cst_22 = arith.constant 8.000000e+00 : f32
      %48 = vector.broadcast %cst_22 : f32 to vector<1x1xf32>
      %49 = arith.divf %47, %48 : vector<1x1xf32>
      %c0_23 = arith.constant 0 : index
      %c0_24 = arith.constant 0 : index
      %50 = vector.load %arg5[%c0_23, %c0_24] : memref<1x1xf32, #tpu.memory_space<vmem>>, vector<1x1xf32>
      tpu.vector_store %arg5[%c0_23, %c0_24], %49 {strides = array<i32>} : memref<1x1xf32, #tpu.memory_space<vmem>>, vector<1x1xf32>,
    } else {
    }
    return
  }
  func.func @transform_0(%arg0: i32) -> (i32, i32) {
    %c0_i32 = arith.constant 0 : i32
    %c0_i32_0 = arith.constant 0 : i32
    return %arg0, %c0_i32 : i32, i32
  }
  func.func @transform_1(%arg0: i32) -> (i32, i32) {
    %c0_i32 = arith.constant 0 : i32
    %c0_i32_0 = arith.constant 0 : i32
    return %arg0, %c0_i32 : i32, i32
  }
  func.func @transform_2(%arg0: i32) -> (i32, i32) {
    %c0_i32 = arith.constant 0 : i32
    %c0_i32_0 = arith.constant 0 : i32
    %c0_i32_1 = arith.constant 0 : i32
    return %c0_i32, %c0_i32_0 : i32, i32
  }
  func.func @transform_3(%arg0: i32) -> (i32, i32) {
    %c0_i32 = arith.constant 0 : i32
    %c0_i32_0 = arith.constant 0 : i32
    %c0_i32_1 = arith.constant 0 : i32
    return %c0_i32, %c0_i32_0 : i32, i32
  }
  func.func @transform_4(%arg0: i32) -> (i32, i32) {
    %c0_i32 = arith.constant 0 : i32
    %c0_i32_0 = arith.constant 0 : i32
    %c0_i32_1 = arith.constant 0 : i32
    return %c0_i32, %c0_i32_0 : i32, i32
  }
}

</mosaic_0001>

<bundles_post_ra>
// kernel: tpu_custom_call.1
= control target key start
LH: loop header
LB: loop body
LE: loop exit
PB: predicated region body
PF: predicated region fallthrough
CT: control target
= control target key end

     0   :  { %v140_v4 = vmov 0   ;;  %s186_s0 = inlined_call_operand.vmem [shape: f32[8,128], index: 0, kind: input, shape index: {}]   ;;  %s187_s1 = inlined_call_operand.vmem [shape: s32[8,1], index: 1, kind: input, shape index: {}]   ;;  %s188_s2 = inlined_call_operand.vmem [shape: f32[1,128], index: 2, kind: input, shape index: {}]   ;;  %s189_s3 = inlined_call_operand.vmem [shape: f32[1,128], index: 3, kind: input, shape index: {}]   ;;  %s190_s4 = inlined_call_operand.hbm [shape: f32[1,1], index: 4, kind: output, shape index: {}]  }
   0x1   :  { %v24_v0 = vld [vmem:[%s186_s0] sm:$0xff]  ;;  %113 = vset.pattern.permute.xlu0 %v140_v4 }
   0x2   :  { %v106_v1 = vld [vmem:[%s188_s2] ss:$0 sm:$0xff] }
   0x3   :  { %v107_v2 = vld [vmem:[%s189_s3] ss:$0 sm:$0xff]  ;;  %v32_v3 = vmul.f32 %v106_v1, %v24_v0 }
   0x4   :  { %9 = vsyncpa [#allocation4], 0  ;;  %v53_v6 = vld [vmem:[%s187_s1] sm:$0xff]  ;;  %v51_v10 = vlaneseq  ;;  %vm70_vm1 = vcmask 7168   ;;  %vm22_vm2 = vcmask 0   ;;  %v141_v22 = vmov 0.0  }
   0x5   :  { %v40_v5 = vadd.f32 %v107_v2, %v32_v3  ;;  %23 = vst.msk [vmem:[#allocation2] sm:$0x1] %vm22_vm2, %v141_v22  ;;  %s142_s1 = smov [#allocation3]  }
   0x6   :  { %v52_v11 = vand.u32 127, %v51_v10  ;;  %s98_s2 = sshll.u32 %s142_s1, 4  ;;  %s99_s2 = int_to_ptr.vmem [resolvable:$true] %s98_s2 }
   0x7   :  { %41 = vmax.xlane.f32.xlu0 %v40_v5  ;;  %s118_s3 = scalar_lea.vmem %s99_s2, 16  ;;  %s122_s23 = scalar_lea.vmem %s99_s2, 32 }
   0x8   :  { %p119_p0 = scmp.ne.s32.totalorder %s99_s2, %s118_s3  ;;  %p123_p1 = scmp.lt.s32.totalorder %s99_s2, %s99_s2 }
   0x9   :  { %p124_p2 = scmp.lt.s32.totalorder %s122_s23, %s118_s3 }
   0xb   :  { %p125_p3 = por %p124_p2, %p123_p1 }
   0xc   :  { %v69_v30 = vld [vmem:[#allocation2] sm:$0x1] }
   0xd   :  { %p126_p4 = pnand %p125_p3, %p119_p0 }
  0x1d   :  { %55 = vperm.xlu0 %113, %v53_v6  }
  0x90   :  { %v42_v7 = vpop.xlane.xlu0 %41 }
  0x91   :  { %v43_v8 = vsub.f32 %v40_v5, %v42_v7 }
  0x93   :  { %v44_v9 = vmul.f32 1.442695, %v43_v8 }
  0x95   :  { %114 = vpow2.f32 %v44_v9 }
  0x98   :  { %v56_v12 = vpop.permute.xlu0 %55 }
  0x99   :  { %vm57_vm0 = vcmp.eq.s32.totalorder %v52_v11, %v56_v12 }
  0x9a   :  { %v58_v14 = vsel %vm57_vm0, %v40_v5, 0.0 }
  0xa2   :  { %v115_v13 = vpop.eup %114 }
  0xa3   :  { %46 = vadd.xlane.f32.xlu1 %v115_v13 }
  0xa7   :  { %59 = vadd.xlane.f32.xlu1 %v58_v14 }
 0x12c   :  { %v47_v15 = vpop.xlane.xlu1 %46 }
 0x12d   :  { %116 = vlog2.f32 %v47_v15 }
 0x130   :  { %v60_v18 = vpop.xlane.xlu1 %59 }
 0x13a   :  { %v117_v16 = vpop.eup %116 }
 0x13b   :  { %v49_v17 = vmul.f32 0.6931472, %v117_v16 }
 0x13d   :  { %v50_v19 = vadd.f32 %v49_v17, %v42_v7 }
 0x13f   :  { %v61_v20 = vsub.f32 %v50_v19, %v60_v18 }
 0x141   :  { %v71_v21 = vsel %vm70_vm1, %v61_v20, 0.0 }
 0x142   :  { %72 = vadd.xlane.f32.xlu1 %v71_v21 }
 0x1cb   :  { %v73_v23 = vpop.xlane.xlu1 %72 }
 0x1cc   :  { %v74_v24 = vrot.slane %v73_v23, 4 }
 0x1ce   :  { %v75_v25 = vadd.f32 %v74_v24, %v73_v23 }
 0x1d0   :  { %v76_v26 = vrot.slane %v75_v25, 2 }
 0x1d2   :  { %v77_v27 = vadd.f32 %v76_v26, %v75_v25 }
 0x1d4   :  { %v78_v28 = vrot.slane %v77_v27, 1 }
 0x1d6   :  { %v79_v29 = vadd.f32 %v78_v28, %v77_v27 }
 0x1d8   :  { %108 = vpush %v79_v29 }
 0x209   :  { %s109_s0 = spop %108 }
 0x20a   :  { %v81_v31 = vstv %s109_s0 }
 0x20b   :  { %v82_v32 = vadd.f32 %v81_v31, %v69_v30 }
 0x20d   :  { %84 = vst.msk [vmem:[#allocation2] sm:$0x1] %vm22_vm2, %v82_v32 }
 0x214   :  { %v88_v33 = vld [vmem:[#allocation2] sm:$0x1] }
 0x215   :  { %v90_v34 = vmul.f32 0.125, %v88_v33 }
 0x217   :  { %91 = vst.msk [vmem:[#allocation3] sm:$0x1] %vm22_vm2, %v90_v34 }
 0x218   :  { %129 = shalt.err (!%p126_p4)
}
 0x219   :  { %101 = dma.vmem_to_hbm [thread:$0]  %s99_s2, 16, %s190_s4, [#allocation4]  }
 0x21a   :  { %138 = dma.done.wait [#allocation4], 16  }
 0x21b   :  { %139 = vsyncadd [#allocation4], 4294967280 }
 0x21c   :  { %105 = vsyncpa [#allocation4], 1 }

</bundles_post_ra>
